<compile_context>
chip_gen: v7x
topology: tpu7x:2x2x1
jax: 0.10.0
libtpu: 0.0.40
codegen_flags: <defaults>
</compile_context>

<pallas_src>
import jax
import jax.numpy as jnp
from jax.experimental import pallas as pl
from jax.experimental.pallas import tpu as pltpu

LANE = 128
SUBLANE = 8


def _round_up(x, m):
    return (x + m - 1) // m * m


def mlp_kernel(x_ref, w1_ref, b1_ref, w2_ref, b2_ref,
               w3_ref, b3_ref, w4_ref, b4_ref, out_ref):
    # Entire per-tile problem fits in VMEM; fuse all 4 linears + ReLUs.
    x = x_ref[...]                                                   # (TB, D)
    h = jnp.dot(x, w1_ref[...], preferred_element_type=jnp.float32) + b1_ref[...]
    h = jnp.maximum(h, 0.0)
    h = jnp.dot(h, w2_ref[...], preferred_element_type=jnp.float32) + b2_ref[...]
    h = jnp.maximum(h, 0.0)
    h = jnp.dot(h, w3_ref[...], preferred_element_type=jnp.float32) + b3_ref[...]
    h = jnp.maximum(h, 0.0)
    # Last layer: weights lane-padded to 128 cols -> dense (TB, 128) store.
    h = jnp.dot(h, w4_ref[...], preferred_element_type=jnp.float32) + b4_ref[...]
    out_ref[...] = h.astype(out_ref.dtype)                           # no final activation


def _choose_tile_b(B):
    """~512-row tiles; multiple of 8; >=2 grid steps when batch allows (v7x 2 TCs)."""
    b8 = _round_up(B, SUBLANE)
    if b8 >= 2 * SUBLANE:
        tile = min(512, _round_up(b8 // 2, SUBLANE))
    else:
        tile = b8
    return max(SUBLANE, min(tile, 2048))


def loan_prediction_forward(x, params, *, tile_b=None):
    """x: (B, input_size) float32. params: dict of (w_i, b_i), w_i stored [in, out]."""
    B, D = x.shape
    w1, b1 = params["w1"], params["b1"]
    w2, b2 = params["w2"], params["b2"]
    w3, b3 = params["w3"], params["b3"]
    w4, b4 = params["w4"], params["b4"]
    out_dim = w4.shape[1]

    # --- lane-dense output: pad fc4 to a 128-wide output slab -----------------
    out_pad = _round_up(out_dim, LANE)
    w4p = jnp.pad(w4, ((0, 0), (0, out_pad - out_dim)))
    b4p = jnp.pad(b4, ((0, 0), (0, out_pad - out_dim)))

    # --- batch tiling with padding for ragged B --------------------------------
    if tile_b is None:
        tile_b = _choose_tile_b(B)
    tile_b = max(SUBLANE, min(_round_up(tile_b, SUBLANE), 2048))
    B_pad = _round_up(B, tile_b)
    if B_pad != B:
        x = jnp.pad(x, ((0, B_pad - B), (0, 0)))
    grid = (B_pad // tile_b,)

    # Weights/biases: full-array blocks, constant index_map (held resident).
    def full(shape):
        n = len(shape)
        return pl.BlockSpec(shape, lambda i, n=n: (0,) * n)

    # Advisory cost so XLA schedules this tiny custom call sensibly.
    layer_shapes = [w1.shape, w2.shape, w3.shape, w4p.shape]
    flops = 2 * B_pad * sum(fi * fo for fi, fo in layer_shapes)
    weight_elems = sum(int(a.size) for a in (w1, b1, w2, b2, w3, b3, w4p, b4p))
    cost = pl.CostEstimate(
        flops=flops,
        transcendentals=0,
        bytes_accessed=4 * (B_pad * D + B_pad * out_pad + weight_elems),
    )

    out = pl.pallas_call(
        mlp_kernel,
        out_shape=jax.ShapeDtypeStruct((B_pad, out_pad), jnp.float32),
        grid_spec=pltpu.PrefetchScalarGridSpec(
            num_scalar_prefetch=0,
            grid=grid,
            in_specs=[
                pl.BlockSpec((tile_b, D), lambda i: (i, 0)),   # x (batch-tiled)
                full(w1.shape), full(b1.shape),
                full(w2.shape), full(b2.shape),
                full(w3.shape), full(b3.shape),
                full(w4p.shape), full(b4p.shape),
            ],
            out_specs=pl.BlockSpec((tile_b, out_pad), lambda i: (i, 0)),
        ),
        compiler_params=pltpu.CompilerParams(
            dimension_semantics=("parallel",)),
        cost_estimate=cost,
    )(x, w1, b1, w2, b2, w3, b3, w4p, b4p)

    # Strip batch padding and the lane padding of the final layer.
    return out[:B, :out_dim]


def init_params(key, input_size):
    """Deterministic init mirroring nn.Linear shapes.
    PyTorch stores W as [out, in]; we keep them as [in, out] (pre-transposed)."""
    dims = [(input_size, 64), (64, 32), (32, 16), (16, 2)]
    params = {}
    for idx, (fan_in, fan_out) in enumerate(dims, start=1):
        key, kw, kb = jax.random.split(key, 3)
        bound = 1.0 / jnp.sqrt(fan_in)
        params[f"w{idx}"] = jax.random.uniform(
            kw, (fan_in, fan_out), jnp.float32, -bound, bound)
        # biases kept 2D (1, out) so they broadcast cleanly over the batch tile
        params[f"b{idx}"] = jax.random.uniform(
            kb, (1, fan_out), jnp.float32, -bound, bound)
    return params


def reference_forward(x, params):
    h = jnp.maximum(x @ params["w1"] + params["b1"], 0.0)
    h = jnp.maximum(h @ params["w2"] + params["b2"], 0.0)
    h = jnp.maximum(h @ params["w3"] + params["b3"], 0.0)
    return h @ params["w4"] + params["b4"]


if __name__ == "__main__":
    key = jax.random.PRNGKey(0)
    input_size = 16   # stand-in for X_train.shape[1]

    key, kp = jax.random.split(key)
    params = init_params(kp, input_size)

    # Test 1: tiny batch (single grid step, default tile chooser).
    key, kx1 = jax.random.split(key)
    x1 = jax.random.normal(kx1, (8, input_size), jnp.float32)
    out1 = jax.block_until_ready(loan_prediction_forward(x1, params))
    ref1 = reference_forward(x1, params)
    assert out1.shape == (8, 2), out1.shape
    assert jnp.allclose(out1, ref1, atol=1e-5, rtol=1e-5), (
        f"max abs err {jnp.max(jnp.abs(out1 - ref1))}")

    # Test 2: ragged batch + explicit small tile -> multi-step pipelined grid
    # (exercises batch zero-padding and the "parallel" batch axis).
    key, kx2 = jax.random.split(key)
    x2 = jax.random.normal(kx2, (70, input_size), jnp.float32)
    out2 = jax.block_until_ready(loan_prediction_forward(x2, params, tile_b=16))
    ref2 = reference_forward(x2, params)
    assert out2.shape == (70, 2), out2.shape
    assert jnp.allclose(out2, ref2, atol=1e-5, rtol=1e-5), (
        f"max abs err {jnp.max(jnp.abs(out2 - ref2))}")

    print("KERNEL_OK")
</pallas_src>

<mosaic_0001>
module attributes {stable_mosaic.version = 11 : i64} {
  func.func @mlp_kernel(%arg0: i32, %arg1: memref<8x16xf32, #tpu.memory_space<vmem>>, %arg2: memref<16x64xf32, #tpu.memory_space<vmem>>, %arg3: memref<1x64xf32, #tpu.memory_space<vmem>>, %arg4: memref<64x32xf32, #tpu.memory_space<vmem>>, %arg5: memref<1x32xf32, #tpu.memory_space<vmem>>, %arg6: memref<32x16xf32, #tpu.memory_space<vmem>>, %arg7: memref<1x16xf32, #tpu.memory_space<vmem>>, %arg8: memref<16x128xf32, #tpu.memory_space<vmem>>, %arg9: memref<1x128xf32, #tpu.memory_space<vmem>>, %arg10: memref<8x128xf32, #tpu.memory_space<vmem>>) attributes {dimension_semantics = [#tpu.dimension_semantics<parallel>], iteration_bounds = array<i64: 1>, scalar_prefetch = 0 : i64, scratch_operands = 0 : i64, tpu.core_type = #tpu.core_type<tc>, window_params = [{transform_indices = @transform_0, window_bounds = array<i64: 8, 16>}, {pipeline_mode = #tpu.pipeline_mode<synchronous>, transform_indices = @transform_1, window_bounds = array<i64: 16, 64>}, {pipeline_mode = #tpu.pipeline_mode<synchronous>, transform_indices = @transform_2, window_bounds = array<i64: 1, 64>}, {pipeline_mode = #tpu.pipeline_mode<synchronous>, transform_indices = @transform_3, window_bounds = array<i64: 64, 32>}, {pipeline_mode = #tpu.pipeline_mode<synchronous>, transform_indices = @transform_4, window_bounds = array<i64: 1, 32>}, {pipeline_mode = #tpu.pipeline_mode<synchronous>, transform_indices = @transform_5, window_bounds = array<i64: 32, 16>}, {pipeline_mode = #tpu.pipeline_mode<synchronous>, transform_indices = @transform_6, window_bounds = array<i64: 1, 16>}, {pipeline_mode = #tpu.pipeline_mode<synchronous>, transform_indices = @transform_7, window_bounds = array<i64: 16, 128>}, {pipeline_mode = #tpu.pipeline_mode<synchronous>, transform_indices = @transform_8, window_bounds = array<i64: 1, 128>}, {transform_indices = @transform_9, window_bounds = array<i64: 8, 128>}]} {
    %c0 = arith.constant 0 : index
    %c0_0 = arith.constant 0 : index
    %0 = vector.load %arg1[%c0, %c0_0] : memref<8x16xf32, #tpu.memory_space<vmem>>, vector<8x16xf32>
    %c0_1 = arith.constant 0 : index
    %c0_2 = arith.constant 0 : index
    %1 = vector.load %arg2[%c0_1, %c0_2] : memref<16x64xf32, #tpu.memory_space<vmem>>, vector<16x64xf32>
    %cst = arith.constant dense<0.000000e+00> : vector<8x64xf32>
    %2 = tpu.matmul %0, %1, %cst {dimension_numbers = #tpu.dot_dimension_numbers<[1], [0], [0], [1], [0, 0, 1, 1], [], []>} : vector<8x16xf32>, vector<16x64xf32>, vector<8x64xf32> -> vector<8x64xf32>
    %c0_3 = arith.constant 0 : index
    %c0_4 = arith.constant 0 : index
    %3 = vector.load %arg3[%c0_3, %c0_4] : memref<1x64xf32, #tpu.memory_space<vmem>>, vector<1x64xf32>
    %4 = vector.broadcast %3 : vector<1x64xf32> to vector<8x64xf32>
    %5 = arith.addf %2, %4 : vector<8x64xf32>
    %cst_5 = arith.constant 0.000000e+00 : f32
    %6 = vector.broadcast %cst_5 : f32 to vector<8x64xf32>
    %7 = arith.maximumf %5, %6 : vector<8x64xf32>
    %c0_6 = arith.constant 0 : index
    %c0_7 = arith.constant 0 : index
    %8 = vector.load %arg4[%c0_6, %c0_7] : memref<64x32xf32, #tpu.memory_space<vmem>>, vector<64x32xf32>
    %cst_8 = arith.constant dense<0.000000e+00> : vector<8x32xf32>
    %9 = tpu.matmul %7, %8, %cst_8 {dimension_numbers = #tpu.dot_dimension_numbers<[1], [0], [0], [1], [0, 0, 1, 1], [], []>} : vector<8x64xf32>, vector<64x32xf32>, vector<8x32xf32> -> vector<8x32xf32>
    %c0_9 = arith.constant 0 : index
    %c0_10 = arith.constant 0 : index
    %10 = vector.load %arg5[%c0_9, %c0_10] : memref<1x32xf32, #tpu.memory_space<vmem>>, vector<1x32xf32>
    %11 = vector.broadcast %10 : vector<1x32xf32> to vector<8x32xf32>
    %12 = arith.addf %9, %11 : vector<8x32xf32>
    %cst_11 = arith.constant 0.000000e+00 : f32
    %13 = vector.broadcast %cst_11 : f32 to vector<8x32xf32>
    %14 = arith.maximumf %12, %13 : vector<8x32xf32>
    %c0_12 = arith.constant 0 : index
    %c0_13 = arith.constant 0 : index
    %15 = vector.load %arg6[%c0_12, %c0_13] : memref<32x16xf32, #tpu.memory_space<vmem>>, vector<32x16xf32>
    %cst_14 = arith.constant dense<0.000000e+00> : vector<8x16xf32>
    %16 = tpu.matmul %14, %15, %cst_14 {dimension_numbers = #tpu.dot_dimension_numbers<[1], [0], [0], [1], [0, 0, 1, 1], [], []>} : vector<8x32xf32>, vector<32x16xf32>, vector<8x16xf32> -> vector<8x16xf32>
    %c0_15 = arith.constant 0 : index
    %c0_16 = arith.constant 0 : index
    %17 = vector.load %arg7[%c0_15, %c0_16] : memref<1x16xf32, #tpu.memory_space<vmem>>, vector<1x16xf32>
    %18 = vector.broadcast %17 : vector<1x16xf32> to vector<8x16xf32>
    %19 = arith.addf %16, %18 : vector<8x16xf32>
    %cst_17 = arith.constant 0.000000e+00 : f32
    %20 = vector.broadcast %cst_17 : f32 to vector<8x16xf32>
    %21 = arith.maximumf %19, %20 : vector<8x16xf32>
    %c0_18 = arith.constant 0 : index
    %c0_19 = arith.constant 0 : index
    %22 = vector.load %arg8[%c0_18, %c0_19] : memref<16x128xf32, #tpu.memory_space<vmem>>, vector<16x128xf32>
    %cst_20 = arith.constant dense<0.000000e+00> : vector<8x128xf32>
    %23 = tpu.matmul %21, %22, %cst_20 {dimension_numbers = #tpu.dot_dimension_numbers<[1], [0], [0], [1], [0, 0, 1, 1], [], []>} : vector<8x16xf32>, vector<16x128xf32>, vector<8x128xf32> -> vector<8x128xf32>
    %c0_21 = arith.constant 0 : index
    %c0_22 = arith.constant 0 : index
    %24 = vector.load %arg9[%c0_21, %c0_22] : memref<1x128xf32, #tpu.memory_space<vmem>>, vector<1x128xf32>
    %25 = vector.broadcast %24 : vector<1x128xf32> to vector<8x128xf32>
    %26 = arith.addf %23, %25 : vector<8x128xf32>
    %c0_23 = arith.constant 0 : index
    %c0_24 = arith.constant 0 : index
    %27 = vector.load %arg10[%c0_23, %c0_24] : memref<8x128xf32, #tpu.memory_space<vmem>>, vector<8x128xf32>
    tpu.vector_store %arg10[%c0_23, %c0_24], %26 {strides = array<i32>} : memref<8x128xf32, #tpu.memory_space<vmem>>, vector<8x128xf32>,
    return
  }
  func.func @transform_0(%arg0: i32) -> (i32, i32) {
    %c0_i32 = arith.constant 0 : i32
    %c0_i32_0 = arith.constant 0 : i32
    return %arg0, %c0_i32 : i32, i32
  }
  func.func @transform_1(%arg0: i32) -> (i32, i32) {
    %c0_i32 = arith.constant 0 : i32
    %c0_i32_0 = arith.constant 0 : i32
    %c0_i32_1 = arith.constant 0 : i32
    return %c0_i32, %c0_i32_0 : i32, i32
  }
  func.func @transform_2(%arg0: i32) -> (i32, i32) {
    %c0_i32 = arith.constant 0 : i32
    %c0_i32_0 = arith.constant 0 : i32
    %c0_i32_1 = arith.constant 0 : i32
    return %c0_i32, %c0_i32_0 : i32, i32
  }
  func.func @transform_3(%arg0: i32) -> (i32, i32) {
    %c0_i32 = arith.constant 0 : i32
    %c0_i32_0 = arith.constant 0 : i32
    %c0_i32_1 = arith.constant 0 : i32
    return %c0_i32, %c0_i32_0 : i32, i32
  }
  func.func @transform_4(%arg0: i32) -> (i32, i32) {
    %c0_i32 = arith.constant 0 : i32
    %c0_i32_0 = arith.constant 0 : i32
    %c0_i32_1 = arith.constant 0 : i32
    return %c0_i32, %c0_i32_0 : i32, i32
  }
  func.func @transform_5(%arg0: i32) -> (i32, i32) {
    %c0_i32 = arith.constant 0 : i32
    %c0_i32_0 = arith.constant 0 : i32
    %c0_i32_1 = arith.constant 0 : i32
    return %c0_i32, %c0_i32_0 : i32, i32
  }
  func.func @transform_6(%arg0: i32) -> (i32, i32) {
    %c0_i32 = arith.constant 0 : i32
    %c0_i32_0 = arith.constant 0 : i32
    %c0_i32_1 = arith.constant 0 : i32
    return %c0_i32, %c0_i32_0 : i32, i32
  }
  func.func @transform_7(%arg0: i32) -> (i32, i32) {
    %c0_i32 = arith.constant 0 : i32
    %c0_i32_0 = arith.constant 0 : i32
    %c0_i32_1 = arith.constant 0 : i32
    return %c0_i32, %c0_i32_0 : i32, i32
  }
  func.func @transform_8(%arg0: i32) -> (i32, i32) {
    %c0_i32 = arith.constant 0 : i32
    %c0_i32_0 = arith.constant 0 : i32
    %c0_i32_1 = arith.constant 0 : i32
    return %c0_i32, %c0_i32_0 : i32, i32
  }
  func.func @transform_9(%arg0: i32) -> (i32, i32) {
    %c0_i32 = arith.constant 0 : i32
    %c0_i32_0 = arith.constant 0 : i32
    return %arg0, %c0_i32 : i32, i32
  }
}

</mosaic_0001>

<bundles_post_ra>
// kernel: tpu_custom_call.1
= control target key start
LH: loop header
LB: loop body
LE: loop exit
PB: predicated region body
PF: predicated region fallthrough
CT: control target
= control target key end

     0   :  { %v515_v2 = vmov 0.0|0.0   ;;  %vm516_vm0 = vmmov 0   ;;  %v517_v4 = vmov 0.0   ;;  %vm43_vm1 = vcmask 130048   ;;  %s650_s0 = inlined_call_operand.vmem [shape: f32[8,16], index: 0, kind: input, shape index: {}]   ;;  %s651_s1 = inlined_call_operand.vmem [shape: f32[16,64], index: 1, kind: input, shape index: {}]   ;;  %s652_s2 = inlined_call_operand.vmem [shape: f32[1,64], index: 2, kind: input, shape index: {}]   ;;  %s653_s3 = inlined_call_operand.vmem [shape: f32[64,32], index: 3, kind: input, shape index: {}]   ;;  %s654_s4 = inlined_call_operand.vmem [shape: f32[1,32], index: 4, kind: input, shape index: {}]   ;;  %s655_s5 = inlined_call_operand.vmem [shape: f32[32,16], index: 5, kind: input, shape index: {}]   ;;  %s656_s6 = inlined_call_operand.vmem [shape: f32[1,16], index: 6, kind: input, shape index: {}]   ;;  %s657_s7 = inlined_call_operand.vmem [shape: f32[16,128], index: 7, kind: input, shape index: {}]   ;;  %s658_s8 = inlined_call_operand.vmem [shape: f32[1,128], index: 8, kind: input, shape index: {}]   ;;  %s659_s9 = inlined_call_operand.hbm [shape: f32[8,128], index: 9, kind: output, shape index: {}]  }
   0x1   :  { %v34_v0 = vld [vmem:[%s651_s1] sm:$0xff]  ;;  %v35_v1 = vld [vmem:[%s651_s1 + $0x8] sm:$0xff]  ;;  %463 = vmatprep.subr.bf16.mxu0 %v515_v2  ;;  %423 = vmatprep.mubr.msk.f32.mxu0 %vm516_vm0, %v517_v4  ;;  %v120_v7 = vld [vmem:[%s653_s3 + $0x10] sm:$0xff] }
   0x2   :  { %v464_v3 = vpack.c.bf16 %v35_v1, %v34_v0  ;;  %v118_v5 = vld [vmem:[%s653_s3] sm:$0xff]  ;;  %v119_v6 = vld [vmem:[%s653_s3 + $0x8] sm:$0xff]  ;;  %466 = vmatprep.subr.bf16.mxu1 %v515_v2  ;;  %v121_v9 = vld [vmem:[%s653_s3 + $0x18] sm:$0xff]  ;;  %442 = vmatprep.mubr.msk.f32.mxu1 %vm516_vm0, %v517_v4 }
   0x3   :  { %v467_v8 = vpack.c.bf16 %v119_v6, %v118_v5  ;;  %v33_v10 = vld [vmem:[%s650_s0] sm:$0xff] }
   0x4   :  { %465 = vmatpush3.bf16.msra.mxu0 %v464_v3 }
   0x5   :  { %14 = vsyncpa [#allocation3], 0  ;;  %468 = vmatpush3.bf16.msra.mxu1 %v467_v8  ;;  %v470_v11 = vpack.c.bf16 %v121_v9, %v120_v7  ;;  %478 = vmatprep.subr.bf16.mxu0 %v515_v2  ;;  %v122_v12 = vld [vmem:[%s653_s3 + $0x20] sm:$0xff]  ;;  %v123_v13 = vld [vmem:[%s653_s3 + $0x28] sm:$0xff]  ;;  %vm133_vm2 = vcmask 523264   ;;  %vm219_vm3 = vcmask 261120  }
   0x6   :  { %469 = vmatprep.subr.bf16.mxu1 %v515_v2  ;;  %v473_v14 = vpack.c.bf16 %v123_v13, %v122_v12  ;;  %v124_v15 = vld [vmem:[%s653_s3 + $0x30] sm:$0xff]  ;;  %v125_v16 = vld [vmem:[%s653_s3 + $0x38] sm:$0xff]  ;;  %v208_v18 = vld [vmem:[%s655_s5] sm:$0xff]  ;;  %s518_s23 = smov [#allocation2]  }
   0x7   :  { %424 = vmatmul.mubr.msk.f32.vlgmr.msra.gmra.mrb[0].mxu0 %vm43_vm1, %v33_v10  ;;  %v476_v17 = vpack.c.bf16 %v125_v16, %v124_v15  ;;  %v209_v19 = vld [vmem:[%s655_s5 + $0x8] sm:$0xff]  ;;  %v391_v21 = vld [vmem:[%s652_s2] ss:$0 sm:$0xff]  ;;  %v210_v26 = vld [vmem:[%s655_s5 + $0x10] sm:$0xff]  ;;  %s383_s24 = sshll.u32 %s518_s23, 4  ;;  %s384_s24 = int_to_ptr.vmem [resolvable:$true] %s383_s24 }
   0x8   :  { %453 = vmatprep.mubr.msk.f32.mxu0 %vm516_vm0, %v517_v4  ;;  %v479_v20 = vpack.c.bf16 %v209_v19, %v208_v18  ;;  %v211_v27 = vld [vmem:[%s655_s5 + $0x18] sm:$0xff]  ;;  %v393_v29 = vld [vmem:[%s654_s4] ss:$0 sm:$0xff]  ;;  %v295_v35 = vld [vmem:[%s657_s7 + $0x8] sm:$0xff]  ;;  %p496_p1 = scmp.lt.s32.totalorder %s384_s24, %s384_s24 }
   0x9   :  { %471 = vmatpush3.bf16.msra.mxu1 %v470_v11  ;;  %v482_v28 = vpack.c.bf16 %v211_v27, %v210_v26  ;;  %v294_v34 = vld [vmem:[%s657_s7] sm:$0xff]  ;;  %s491_s7 = scalar_lea.vmem %s384_s24, 128 }
   0xa   :  { %472 = vmatprep.subr.bf16.mxu1 %v515_v2  ;;  %480 = vmatpush3.bf16.msra.mxu0 %v479_v20  ;;  %v485_v36 = vpack.c.bf16 %v295_v35, %v294_v34  ;;  %v395_v37 = vld [vmem:[%s656_s6] ss:$0 sm:$0xff]  ;;  %p492_p0 = scmp.ne.s32.totalorder %s384_s24, %s491_s7  ;;  %p497_p2 = scmp.lt.s32.totalorder %s491_s7, %s491_s7 }
   0xb   :  { %481 = vmatprep.subr.bf16.mxu0 %v515_v2  ;;  %v397_v42 = vld [vmem:[%s658_s8] ss:$0 sm:$0xff] }
   0xc   :  { %p498_p3 = por %p497_p2, %p496_p1 }
   0xd   :  { %474 = vmatpush3.bf16.msra.mxu1 %v473_v14 }
   0xe   :  { %475 = vmatprep.subr.bf16.mxu1 %v515_v2  ;;  %483 = vmatpush3.bf16.msra.mxu0 %v482_v28  ;;  %p499_p4 = pnand %p498_p3, %p492_p0 }
   0xf   :  { %484 = vmatprep.subr.bf16.mxu0 %v515_v2 }
  0x11   :  { %477 = vmatpush3.bf16.msra.mxu1 %v476_v17 }
  0xda   :  { %v113_v22 = vpop.f32.mrb[0].mxu0 }
  0xdb   :  { %v114_v23 = vadd.f32 %v391_v21, %v113_v22  ;;  %v425_v24 = vpop.f32.mrb[1].mxu0 }
  0xdd   :  { %v117_v25 = vmax.f32 %v114_v23, 0.0 }
  0xdf   :  { %443 = vmatmul.mubr.msk.f32.vlgmr.msra.gmra.mrb[0].mxu1 %vm133_vm2, %v117_v25 }
 0x1b2   :  { %v203_v30 = vpop.f32.mrb[0].mxu1 }
 0x1b3   :  { %v204_v31 = vadd.f32 %v393_v29, %v203_v30  ;;  %v444_v32 = vpop.f32.mrb[1].mxu1 }
 0x1b5   :  { %v207_v33 = vmax.f32 %v204_v31, 0.0 }
 0x1b7   :  { %454 = vmatmul.mubr.msk.f32.vlgmr.msra.gmra.mrb[2].mxu0 %vm219_vm3, %v207_v33 }
 0x1b8   :  { %460 = vmatprep.mubr.msk.f32.mxu0 %vm516_vm0, %v517_v4  ;;  %486 = vmatpush3.bf16.msra.mxu0 %v485_v36 }
 0x28a   :  { %v289_v38 = vpop.f32.mrb[2].mxu0 }
 0x28b   :  { %v290_v39 = vadd.f32 %v395_v37, %v289_v38  ;;  %v455_v40 = vpop.f32.mrb[3].mxu0 }
 0x28d   :  { %v293_v41 = vmax.f32 %v290_v39, 0.0 }
 0x28f   :  { %461 = vmatmul.mubr.msk.f32.vlgmr.msra.gmra.mrb[4].mxu0 %vm43_vm1, %v293_v41 }
 0x362   :  { %v372_v43 = vpop.f32.mrb[4].mxu0 }
 0x363   :  { %v373_v44 = vadd.f32 %v397_v42, %v372_v43  ;;  %v462_v45 = vpop.f32.mrb[5].mxu0 }
 0x365   :  { %376 = vst [vmem:[#allocation2] sm:$0xff] %v373_v44 }
 0x366   :  { %502 = shalt.err (!%p499_p4)
}
 0x367   :  { %s503_s0 = scalar_lea.hbm %s659_s9, 128 }
 0x368   :  { %p504_p5 = scmp.ne.s32.totalorder %s659_s9, %s503_s0  ;;  %p507_p6 = scmp.lt.u32.totalorder %s503_s0, %s659_s9 }
 0x36a   :  { %p509_p7 = pnand %p507_p6, %p504_p5 }
 0x36c   :  { %512 = shalt.err (!%p509_p7)
}
 0x36d   :  { %386 = dma.vmem_to_hbm [thread:$0]  %s384_s24, 128, %s659_s9, [#allocation3]  }
 0x36e   :  { %513 = dma.done.wait [#allocation3], 128  }
 0x36f   :  { %514 = vsyncadd [#allocation3], 4294967168 }
 0x370   :  { %390 = vsyncpa [#allocation3], 1 }

</bundles_post_ra>
